<compile_context>
chip_gen: v6e
topology: v6e:2x2x1
jax: 0.10.0
libtpu: 0.0.40
codegen_flags: <defaults>
</compile_context>

<pallas_src>
import jax
import jax.numpy as jnp
from jax.experimental import pallas as pl
from jax.experimental.pallas import tpu as pltpu

LANE = 128
SUBLANE = 8


def _round_up(n, m):
    return ((n + m - 1) // m) * m


def _resident(shape):
    """Constant index_map -> tensor stays VMEM-resident across grid steps."""
    return pl.BlockSpec(shape, lambda i: (0,) * len(shape))


def _vmem_limit_bytes():
    """Half of physical VMEM: 64 MiB on v5e/v6e, 32 MiB on v7x."""
    try:
        cap = pltpu.get_tpu_info().vmem_capacity_bytes
    except Exception:
        cap = 64 * 1024 * 1024
    return min(64 * 1024 * 1024, cap // 2)


def _choose_tile_b(batch):
    """Pick the batch tile: big tiles, little zero-row waste, >=2 grid steps
    when the batch is large enough (so v7x megacore sharding engages)."""
    if batch <= SUBLANE:
        return SUBLANE
    if batch <= 4 * SUBLANE:
        return _round_up(batch, SUBLANE)          # too small to bother splitting
    if batch <= 512:
        # Split into 2 tiles so dimension_semantics="parallel" can use both
        # v7x TensorCores; costs one extra ~0.35us grid step on 1-TC chips.
        return _round_up(-(-batch // 2), SUBLANE)
    best_t, best_key = None, None
    for t in (2048, 1024, 512, 256):
        steps = -(-batch // t)
        waste = steps * t - batch
        # prefer: less padding waste, then >=2 steps (v7x), then bigger tiles.
        key = (waste, 0 if steps >= 2 else 1, -t)
        if best_key is None or key < best_key:
            best_t, best_key = t, key
    return best_t


def actor_mlp_kernel(x_ref, w1_ref, b1_ref, w2_ref, b2_ref, w3_ref, b3_ref,
                     out_ref):
    """Fused 3-layer MLP on one (tile_b, space_dim) batch tile.

    Matmuls run in the weights' dtype (f32 or bf16) with f32 accumulation;
    bias add / ReLU / sigmoid always in f32.
    """
    mm_dtype = w1_ref.dtype
    x = x_ref[...].astype(mm_dtype)

    # Layer 1: Linear + ReLU
    h1 = jnp.dot(x, w1_ref[...], preferred_element_type=jnp.float32)
    h1 = jnp.maximum(h1 + b1_ref[...], 0.0)

    # Layer 2: Linear + ReLU  (padded hidden lanes stay exactly 0 through ReLU)
    h2 = jnp.dot(h1.astype(mm_dtype), w2_ref[...],
                 preferred_element_type=jnp.float32)
    h2 = jnp.maximum(h2 + b2_ref[...], 0.0)

    # Layer 3: Linear + Sigmoid, written at the real action_dim width.
    z = jnp.dot(h2.astype(mm_dtype), w3_ref[...],
                preferred_element_type=jnp.float32)
    out_ref[...] = jax.nn.sigmoid(z + b3_ref[...]).astype(out_ref.dtype)


def prepare_actor_params(w1, b1, w2, b2, w3, b3, matmul_dtype=jnp.float32):
    """One-time parameter prep, hoisted OUT of the per-step forward.

    Expects weights in (in_features, out_features) layout and biases of shape
    (out_features,) or (1, out_features).  NOTE: raw PyTorch nn.Linear weights
    are (out, in) and must be transposed before calling this.
    Only the hidden dim is zero-padded (to a multiple of 128 lanes); space_dim
    and action_dim stay at their true width.
    """
    w1, w2, w3 = (jnp.asarray(w, jnp.float32) for w in (w1, w2, w3))
    space_dim, hidden_dim = w1.shape
    assert w2.shape == (hidden_dim, hidden_dim), "w2 must be (hidden, hidden)"
    assert w3.shape[0] == hidden_dim, "w3 must be (hidden, action_dim)"
    action_dim = w3.shape[1]
    hd_p = _round_up(hidden_dim, LANE)

    def prep_w(w, rows, cols):
        w = jnp.pad(w, ((0, rows - w.shape[0]), (0, cols - w.shape[1])))
        return w.astype(matmul_dtype)

    def prep_b(b, cols):
        b = jnp.asarray(b, jnp.float32).reshape(1, -1)
        assert b.shape[1] <= cols
        return jnp.pad(b, ((0, 0), (0, cols - b.shape[1])))  # biases stay f32

    return (prep_w(w1, space_dim, hd_p), prep_b(b1, hd_p),
            prep_w(w2, hd_p, hd_p),      prep_b(b2, hd_p),
            prep_w(w3, hd_p, action_dim), prep_b(b3, action_dim))


@jax.jit
def actor_forward(x, params):
    """Run the fused kernel over a batch-parallel grid."""
    w1, b1, w2, b2, w3, b3 = params
    batch, space_dim = x.shape
    assert w1.shape[0] == space_dim, "x / w1 in_features mismatch"
    action_dim = w3.shape[1]

    tile_b = _choose_tile_b(batch)
    batch_p = _round_up(batch, tile_b)
    grid = (batch_p // tile_b,)

    x32 = x.astype(jnp.float32)
    if batch_p != batch:
        x32 = jnp.pad(x32, ((0, batch_p - batch), (0, 0)))

    out = pl.pallas_call(
        actor_mlp_kernel,
        out_shape=jax.ShapeDtypeStruct((batch_p, action_dim), jnp.float32),
        grid=grid,
        in_specs=[
            # x: tiled over batch; minor dim is the full space_dim (no HBM pad).
            pl.BlockSpec((tile_b, space_dim), lambda i: (i, 0)),
            _resident(w1.shape), _resident(b1.shape),
            _resident(w2.shape), _resident(b2.shape),
            _resident(w3.shape), _resident(b3.shape),
        ],
        # Output at the real action_dim width: masked stores, 32x fewer bytes.
        out_specs=pl.BlockSpec((tile_b, action_dim), lambda i: (i, 0)),
        compiler_params=pltpu.CompilerParams(
            dimension_semantics=("parallel",),   # megacore sharding on v7x
            vmem_limit_bytes=_vmem_limit_bytes(),
        ),
    )(x32, w1, b1, w2, b2, w3, b3)

    if batch_p != batch:
        out = out[:batch]
    return out


def init_actor_params(key, space_dim, action_dim, hidden_dim):
    """PyTorch-style init: U(-1/sqrt(fan_in), 1/sqrt(fan_in)); weights stored
    as (in_features, out_features), biases as (1, out_features)."""
    keys = jax.random.split(key, 6)

    def linear(kw, kb, fan_in, fan_out):
        bound = 1.0 / jnp.sqrt(jnp.float32(fan_in))
        w = jax.random.uniform(kw, (fan_in, fan_out), jnp.float32, -bound, bound)
        b = jax.random.uniform(kb, (1, fan_out), jnp.float32, -bound, bound)
        return w, b

    w1, b1 = linear(keys[0], keys[1], space_dim, hidden_dim)
    w2, b2 = linear(keys[2], keys[3], hidden_dim, hidden_dim)
    w3, b3 = linear(keys[4], keys[5], hidden_dim, action_dim)
    return w1, b1, w2, b2, w3, b3


def reference_forward(x, w1, b1, w2, b2, w3, b3):
    h1 = jnp.maximum(x @ w1 + b1, 0.0)
    h2 = jnp.maximum(h1 @ w2 + b2, 0.0)
    return jax.nn.sigmoid(h2 @ w3 + b3)


if __name__ == "__main__":
    # Small shapes consistent with the module's forward (x: (batch, space_dim)).
    batch, space_dim, hidden_dim, action_dim = 2, 16, 32, 4

    key = jax.random.PRNGKey(0)
    key_x, key_p = jax.random.split(key)

    x = jax.random.normal(key_x, (batch, space_dim), dtype=jnp.float32)
    raw_params = init_actor_params(key_p, space_dim, action_dim, hidden_dim)

    # f32 path (matches PyTorch numerics).
    params = prepare_actor_params(*raw_params)
    out = jax.block_until_ready(actor_forward(x, params))
    ref = reference_forward(x, *raw_params)
    assert out.shape == (batch, action_dim)
    assert jnp.allclose(out, ref, atol=1e-5, rtol=1e-5)

    # Larger batch: exercises multi-step grid, waste-free tiling, pipelining.
    xb = jax.random.normal(key_x, (1536, space_dim), dtype=jnp.float32)
    outb = jax.block_until_ready(actor_forward(xb, params))
    refb = reference_forward(xb, *raw_params)
    assert outb.shape == (1536, action_dim)
    assert jnp.allclose(outb, refb, atol=1e-5, rtol=1e-5)

    # Optional bf16-matmul path (faster MXU / half the weight+x read traffic on
    # v6e/v7x); elementwise stays f32, so only matmul rounding differs.
    params_bf16 = prepare_actor_params(*raw_params, matmul_dtype=jnp.bfloat16)
    outc = jax.block_until_ready(actor_forward(xb, params_bf16))
    assert outc.shape == (1536, action_dim)
    assert jnp.allclose(outc, refb, atol=2e-2, rtol=2e-2)

    print("KERNEL_OK")
</pallas_src>

<mosaic_0001>
module attributes {stable_mosaic.version = 11 : i64} {
  func.func @actor_mlp_kernel(%arg0: i32, %arg1: memref<8x16xf32, #tpu.memory_space<vmem>>, %arg2: memref<16x128xf32, #tpu.memory_space<vmem>>, %arg3: memref<1x128xf32, #tpu.memory_space<vmem>>, %arg4: memref<128x128xf32, #tpu.memory_space<vmem>>, %arg5: memref<1x128xf32, #tpu.memory_space<vmem>>, %arg6: memref<128x4xf32, #tpu.memory_space<vmem>>, %arg7: memref<1x4xf32, #tpu.memory_space<vmem>>, %arg8: memref<8x4xf32, #tpu.memory_space<vmem>>) attributes {dimension_semantics = [#tpu.dimension_semantics<parallel>], iteration_bounds = array<i64: 1>, scalar_prefetch = 0 : i64, scratch_operands = 0 : i64, tpu.core_type = #tpu.core_type<tc>, window_params = [{transform_indices = @transform_0, window_bounds = array<i64: 8, 16>}, {pipeline_mode = #tpu.pipeline_mode<synchronous>, transform_indices = @transform_1, window_bounds = array<i64: 16, 128>}, {pipeline_mode = #tpu.pipeline_mode<synchronous>, transform_indices = @transform_2, window_bounds = array<i64: 1, 128>}, {pipeline_mode = #tpu.pipeline_mode<synchronous>, transform_indices = @transform_3, window_bounds = array<i64: 128, 128>}, {pipeline_mode = #tpu.pipeline_mode<synchronous>, transform_indices = @transform_4, window_bounds = array<i64: 1, 128>}, {pipeline_mode = #tpu.pipeline_mode<synchronous>, transform_indices = @transform_5, window_bounds = array<i64: 128, 4>}, {pipeline_mode = #tpu.pipeline_mode<synchronous>, transform_indices = @transform_6, window_bounds = array<i64: 1, 4>}, {transform_indices = @transform_7, window_bounds = array<i64: 8, 4>}]} {
    %c0 = arith.constant 0 : index
    %c0_0 = arith.constant 0 : index
    %0 = vector.load %arg1[%c0, %c0_0] : memref<8x16xf32, #tpu.memory_space<vmem>>, vector<8x16xf32>
    %c0_1 = arith.constant 0 : index
    %c0_2 = arith.constant 0 : index
    %1 = vector.load %arg2[%c0_1, %c0_2] : memref<16x128xf32, #tpu.memory_space<vmem>>, vector<16x128xf32>
    %cst = arith.constant dense<0.000000e+00> : vector<8x128xf32>
    %2 = tpu.matmul %0, %1, %cst {dimension_numbers = #tpu.dot_dimension_numbers<[1], [0], [0], [1], [0, 0, 1, 1], [], []>} : vector<8x16xf32>, vector<16x128xf32>, vector<8x128xf32> -> vector<8x128xf32>
    %c0_3 = arith.constant 0 : index
    %c0_4 = arith.constant 0 : index
    %3 = vector.load %arg3[%c0_3, %c0_4] : memref<1x128xf32, #tpu.memory_space<vmem>>, vector<1x128xf32>
    %4 = vector.broadcast %3 : vector<1x128xf32> to vector<8x128xf32>
    %5 = arith.addf %2, %4 : vector<8x128xf32>
    %cst_5 = arith.constant 0.000000e+00 : f32
    %6 = vector.broadcast %cst_5 : f32 to vector<8x128xf32>
    %7 = arith.maximumf %5, %6 : vector<8x128xf32>
    %c0_6 = arith.constant 0 : index
    %c0_7 = arith.constant 0 : index
    %8 = vector.load %arg4[%c0_6, %c0_7] : memref<128x128xf32, #tpu.memory_space<vmem>>, vector<128x128xf32>
    %cst_8 = arith.constant dense<0.000000e+00> : vector<8x128xf32>
    %9 = tpu.matmul %7, %8, %cst_8 {dimension_numbers = #tpu.dot_dimension_numbers<[1], [0], [0], [1], [0, 0, 1, 1], [], []>} : vector<8x128xf32>, vector<128x128xf32>, vector<8x128xf32> -> vector<8x128xf32>
    %c0_9 = arith.constant 0 : index
    %c0_10 = arith.constant 0 : index
    %10 = vector.load %arg5[%c0_9, %c0_10] : memref<1x128xf32, #tpu.memory_space<vmem>>, vector<1x128xf32>
    %11 = vector.broadcast %10 : vector<1x128xf32> to vector<8x128xf32>
    %12 = arith.addf %9, %11 : vector<8x128xf32>
    %cst_11 = arith.constant 0.000000e+00 : f32
    %13 = vector.broadcast %cst_11 : f32 to vector<8x128xf32>
    %14 = arith.maximumf %12, %13 : vector<8x128xf32>
    %c0_12 = arith.constant 0 : index
    %c0_13 = arith.constant 0 : index
    %15 = vector.load %arg6[%c0_12, %c0_13] : memref<128x4xf32, #tpu.memory_space<vmem>>, vector<128x4xf32>
    %cst_14 = arith.constant dense<0.000000e+00> : vector<8x4xf32>
    %16 = tpu.matmul %14, %15, %cst_14 {dimension_numbers = #tpu.dot_dimension_numbers<[1], [0], [0], [1], [0, 0, 1, 1], [], []>} : vector<8x128xf32>, vector<128x4xf32>, vector<8x4xf32> -> vector<8x4xf32>
    %c0_15 = arith.constant 0 : index
    %c0_16 = arith.constant 0 : index
    %17 = vector.load %arg7[%c0_15, %c0_16] : memref<1x4xf32, #tpu.memory_space<vmem>>, vector<1x4xf32>
    %18 = vector.broadcast %17 : vector<1x4xf32> to vector<8x4xf32>
    %19 = arith.addf %16, %18 : vector<8x4xf32>
    %20 = arith.negf %19 : vector<8x4xf32>
    %21 = math.exp %20 : vector<8x4xf32>
    %cst_17 = arith.constant 1.000000e+00 : f32
    %22 = vector.broadcast %cst_17 : f32 to vector<8x4xf32>
    %23 = arith.addf %22, %21 : vector<8x4xf32>
    %24 = arith.divf %22, %23 : vector<8x4xf32>
    %c0_18 = arith.constant 0 : index
    %c0_19 = arith.constant 0 : index
    %25 = vector.load %arg8[%c0_18, %c0_19] : memref<8x4xf32, #tpu.memory_space<vmem>>, vector<8x4xf32>
    tpu.vector_store %arg8[%c0_18, %c0_19], %24 {strides = array<i32>} : memref<8x4xf32, #tpu.memory_space<vmem>>, vector<8x4xf32>,
    return
  }
  func.func @transform_0(%arg0: i32) -> (i32, i32) {
    %c0_i32 = arith.constant 0 : i32
    %c0_i32_0 = arith.constant 0 : i32
    return %arg0, %c0_i32 : i32, i32
  }
  func.func @transform_1(%arg0: i32) -> (i32, i32) {
    %c0_i32 = arith.constant 0 : i32
    %c0_i32_0 = arith.constant 0 : i32
    %c0_i32_1 = arith.constant 0 : i32
    return %c0_i32, %c0_i32_0 : i32, i32
  }
  func.func @transform_2(%arg0: i32) -> (i32, i32) {
    %c0_i32 = arith.constant 0 : i32
    %c0_i32_0 = arith.constant 0 : i32
    %c0_i32_1 = arith.constant 0 : i32
    return %c0_i32, %c0_i32_0 : i32, i32
  }
  func.func @transform_3(%arg0: i32) -> (i32, i32) {
    %c0_i32 = arith.constant 0 : i32
    %c0_i32_0 = arith.constant 0 : i32
    %c0_i32_1 = arith.constant 0 : i32
    return %c0_i32, %c0_i32_0 : i32, i32
  }
  func.func @transform_4(%arg0: i32) -> (i32, i32) {
    %c0_i32 = arith.constant 0 : i32
    %c0_i32_0 = arith.constant 0 : i32
    %c0_i32_1 = arith.constant 0 : i32
    return %c0_i32, %c0_i32_0 : i32, i32
  }
  func.func @transform_5(%arg0: i32) -> (i32, i32) {
    %c0_i32 = arith.constant 0 : i32
    %c0_i32_0 = arith.constant 0 : i32
    %c0_i32_1 = arith.constant 0 : i32
    return %c0_i32, %c0_i32_0 : i32, i32
  }
  func.func @transform_6(%arg0: i32) -> (i32, i32) {
    %c0_i32 = arith.constant 0 : i32
    %c0_i32_0 = arith.constant 0 : i32
    %c0_i32_1 = arith.constant 0 : i32
    return %c0_i32, %c0_i32_0 : i32, i32
  }
  func.func @transform_7(%arg0: i32) -> (i32, i32) {
    %c0_i32 = arith.constant 0 : i32
    %c0_i32_0 = arith.constant 0 : i32
    return %arg0, %c0_i32 : i32, i32
  }
}

</mosaic_0001>

<bundles_post_ra>
// kernel: actor_forward.1
= control target key start
LH: loop header
LB: loop body
LE: loop exit
PB: predicated region body
PF: predicated region fallthrough
CT: control target
= control target key end

     0   :  { %v435_v0 = vmov 0.0   ;;  %vm436_vm0 = vmmov 0   ;;  %vm36_vm1 = vcmask 130048   ;;  %vm304_vm2 = vcmask 31744   ;;  %s634_s1 = inlined_call_operand.vmem [shape: f32[16,128], index: 1, kind: input, shape index: {}]   ;;  %s635_s0 = inlined_call_operand.vmem [shape: f32[8,16], index: 0, kind: input, shape index: {}]   ;;  %s636_s3 = inlined_call_operand.vmem [shape: f32[128,128], index: 3, kind: input, shape index: {}]   ;;  %s637_s5 = inlined_call_operand.vmem [shape: f32[128,4], index: 5, kind: input, shape index: {}]   ;;  %s638_s2 = inlined_call_operand.vmem [shape: f32[1,128], index: 2, kind: input, shape index: {}]   ;;  %s639_s4 = inlined_call_operand.vmem [shape: f32[1,128], index: 4, kind: input, shape index: {}]   ;;  %s640_s6 = inlined_call_operand.vmem [shape: f32[1,4], index: 6, kind: input, shape index: {}]   ;;  %s641_s7 = inlined_call_operand.vmem [shape: f32[8,4], index: 7, kind: output, shape index: {}]  }
   0x1   :  { %352 = vmatprep.subr.mxu0 %v435_v0  ;;  %v28_v1 = vld [vmem:[%s634_s1 + $0x8] sm:$0xff]  ;;  %v27_v2 = vld [vmem:[%s634_s1] sm:$0xff]  ;;  %356 = vmatprep.mubr.msk.f32.mxu0 %vm436_vm0, %v435_v0  ;;  %v126_v4 = vld [vmem:[%s636_s3 + $0x78] sm:$0xff] }
   0x2   :  { %353 = vmatpush3.msra.mxu0 %v28_v1  ;;  %v26_v3 = vld [vmem:[%s635_s0] sm:$0xff]  ;;  %359 = vmatprep.subr.mxu1 %v435_v0  ;;  %v125_v5 = vld [vmem:[%s636_s3 + $0x70] sm:$0xff]  ;;  %v124_v6 = vld [vmem:[%s636_s3 + $0x68] sm:$0xff] }
   0x3   :  { %354 = vmatprep.subr.mxu0 %v435_v0  ;;  %360 = vmatpush3.msra.mxu1 %v126_v4  ;;  %v123_v7 = vld [vmem:[%s636_s3 + $0x60] sm:$0xff]  ;;  %v122_v8 = vld [vmem:[%s636_s3 + $0x58] sm:$0xff]  ;;  %v121_v9 = vld [vmem:[%s636_s3 + $0x50] sm:$0xff] }
   0x4   :  { %355 = vmatpush3.msra.mxu0 %v27_v2  ;;  %361 = vmatprep.subr.mxu1 %v435_v0  ;;  %v120_v10 = vld [vmem:[%s636_s3 + $0x48] sm:$0xff]  ;;  %v119_v11 = vld [vmem:[%s636_s3 + $0x40] sm:$0xff]  ;;  %v118_v12 = vld [vmem:[%s636_s3 + $0x38] sm:$0xff] }
   0x5   :  { %357 = vmatmul.mubr.msk.f32.vlgmr.msra.gmra.mxu0 %vm36_vm1, %v26_v3  ;;  %362 = vmatpush3.msra.mxu1 %v125_v5  ;;  %v117_v13 = vld [vmem:[%s636_s3 + $0x30] sm:$0xff]  ;;  %v116_v14 = vld [vmem:[%s636_s3 + $0x28] sm:$0xff]  ;;  %v115_v15 = vld [vmem:[%s636_s3 + $0x20] sm:$0xff] }
   0x6   :  { %363 = vmatprep.subr.mxu1 %v435_v0  ;;  %391 = vmatprep.mubr.msk.f32.mxu1 %vm436_vm0, %v435_v0  ;;  %v114_v16 = vld [vmem:[%s636_s3 + $0x18] sm:$0xff]  ;;  %v113_v17 = vld [vmem:[%s636_s3 + $0x10] sm:$0xff]  ;;  %v112_v18 = vld [vmem:[%s636_s3 + $0x8] sm:$0xff] }
   0x7   :  { %364 = vmatpush3.msra.mxu1 %v124_v6  ;;  %394 = vmatprep.subr.mxu0 %v435_v0  ;;  %v111_v19 = vld [vmem:[%s636_s3] sm:$0xff]  ;;  %v220_v20 = vld [vmem:[%s637_s5 + $0x78] sm:$0xff]  ;;  %v219_v21 = vld [vmem:[%s637_s5 + $0x70] sm:$0xff] }
   0x8   :  { %365 = vmatprep.subr.mxu1 %v435_v0  ;;  %426 = vmatprep.mubr.msk.f32.mxu0 %vm436_vm0, %v435_v0  ;;  %v218_v22 = vld [vmem:[%s637_s5 + $0x68] sm:$0xff]  ;;  %v217_v23 = vld [vmem:[%s637_s5 + $0x60] sm:$0xff]  ;;  %v216_v24 = vld [vmem:[%s637_s5 + $0x58] sm:$0xff] }
   0x9   :  { %366 = vmatpush3.msra.mxu1 %v123_v7  ;;  %395 = vmatpush3.msra.mxu0 %v220_v20  ;;  %v215_v25 = vld [vmem:[%s637_s5 + $0x50] sm:$0xff]  ;;  %v214_v26 = vld [vmem:[%s637_s5 + $0x48] sm:$0xff]  ;;  %v213_v27 = vld [vmem:[%s637_s5 + $0x40] sm:$0xff] }
   0xa   :  { %367 = vmatprep.subr.mxu1 %v435_v0  ;;  %396 = vmatprep.subr.mxu0 %v435_v0  ;;  %v212_v28 = vld [vmem:[%s637_s5 + $0x38] sm:$0xff]  ;;  %v211_v29 = vld [vmem:[%s637_s5 + $0x30] sm:$0xff]  ;;  %v210_v30 = vld [vmem:[%s637_s5 + $0x28] sm:$0xff] }
   0xb   :  { %368 = vmatpush3.msra.mxu1 %v122_v8  ;;  %397 = vmatpush3.msra.mxu0 %v219_v21  ;;  %v209_v31 = vld [vmem:[%s637_s5 + $0x20] sm:$0xff]  ;;  %v208_v32 = vld [vmem:[%s637_s5 + $0x18] sm:$0xff]  ;;  %v207_v38 = vld [vmem:[%s637_s5 + $0x10] sm:$0xff] }
   0xc   :  { %369 = vmatprep.subr.mxu1 %v435_v0  ;;  %398 = vmatprep.subr.mxu0 %v435_v0  ;;  %v310_v33 = vld [vmem:[%s638_s2] ss:$0 sm:$0xff]  ;;  %v206_v39 = vld [vmem:[%s637_s5 + $0x8] sm:$0xff] }
   0xd   :  { %370 = vmatpush3.msra.mxu1 %v121_v9  ;;  %399 = vmatpush3.msra.mxu0 %v218_v22  ;;  %v205_v40 = vld [vmem:[%s637_s5] sm:$0xff] }
   0xe   :  { %371 = vmatprep.subr.mxu1 %v435_v0  ;;  %400 = vmatprep.subr.mxu0 %v435_v0  ;;  %v312_v41 = vld [vmem:[%s639_s4] ss:$0 sm:$0xff] }
   0xf   :  { %372 = vmatpush3.msra.mxu1 %v120_v10  ;;  %401 = vmatpush3.msra.mxu0 %v217_v23  ;;  %v313_v46 = vld [vmem:[%s640_s6] ss:$0 sm:$0xff] }
  0x10   :  { %373 = vmatprep.subr.mxu1 %v435_v0  ;;  %402 = vmatprep.subr.mxu0 %v435_v0 }
  0x11   :  { %374 = vmatpush3.msra.mxu1 %v119_v11  ;;  %403 = vmatpush3.msra.mxu0 %v216_v24 }
  0x12   :  { %375 = vmatprep.subr.mxu1 %v435_v0  ;;  %404 = vmatprep.subr.mxu0 %v435_v0 }
  0x13   :  { %376 = vmatpush3.msra.mxu1 %v118_v12  ;;  %405 = vmatpush3.msra.mxu0 %v215_v25 }
  0x14   :  { %377 = vmatprep.subr.mxu1 %v435_v0  ;;  %406 = vmatprep.subr.mxu0 %v435_v0 }
  0x15   :  { %378 = vmatpush3.msra.mxu1 %v117_v13  ;;  %407 = vmatpush3.msra.mxu0 %v214_v26 }
  0x16   :  { %379 = vmatprep.subr.mxu1 %v435_v0  ;;  %408 = vmatprep.subr.mxu0 %v435_v0 }
  0x17   :  { %380 = vmatpush3.msra.mxu1 %v116_v14  ;;  %409 = vmatpush3.msra.mxu0 %v213_v27 }
  0x18   :  { %381 = vmatprep.subr.mxu1 %v435_v0  ;;  %410 = vmatprep.subr.mxu0 %v435_v0 }
  0x19   :  { %382 = vmatpush3.msra.mxu1 %v115_v15  ;;  %411 = vmatpush3.msra.mxu0 %v212_v28 }
  0x1a   :  { %383 = vmatprep.subr.mxu1 %v435_v0  ;;  %412 = vmatprep.subr.mxu0 %v435_v0 }
  0x1b   :  { %384 = vmatpush3.msra.mxu1 %v114_v16  ;;  %413 = vmatpush3.msra.mxu0 %v211_v29 }
  0x1c   :  { %385 = vmatprep.subr.mxu1 %v435_v0  ;;  %414 = vmatprep.subr.mxu0 %v435_v0 }
  0x1d   :  { %386 = vmatpush3.msra.mxu1 %v113_v17  ;;  %415 = vmatpush3.msra.mxu0 %v210_v30 }
  0x1e   :  { %387 = vmatprep.subr.mxu1 %v435_v0  ;;  %416 = vmatprep.subr.mxu0 %v435_v0 }
  0x1f   :  { %388 = vmatpush3.msra.mxu1 %v112_v18  ;;  %417 = vmatpush3.msra.mxu0 %v209_v31 }
  0x20   :  { %389 = vmatprep.subr.mxu1 %v435_v0  ;;  %418 = vmatprep.subr.mxu0 %v435_v0 }
  0x21   :  { %390 = vmatpush3.msra.mxu1 %v111_v19  ;;  %419 = vmatpush3.msra.mxu0 %v208_v32 }
  0x22   :  { %420 = vmatprep.subr.mxu0 %v435_v0 }
  0x23   :  { %421 = vmatpush3.msra.mxu0 %v207_v38 }
  0x24   :  { %422 = vmatprep.subr.mxu0 %v435_v0 }
  0x25   :  { %423 = vmatpush3.msra.mxu0 %v206_v39 }
  0x26   :  { %424 = vmatprep.subr.mxu0 %v435_v0 }
  0x27   :  { %425 = vmatpush3.msra.mxu0 %v205_v40 }
  0xc5   :  { %v106_v34 = vpop.f32.mrf.mxu0 }
  0xc6   :  { %v107_v35 = vadd.f32 %v310_v33, %v106_v34 }
  0xc7   :  { %v358_v36 = vpop.f32.mrf.mxu0 }
  0xc8   :  { %v110_v37 = vmax.f32 %v107_v35, 0.0 }
  0xca   :  { %392 = vmatmul.mubr.f32.vlgmr.msra.gmra.mxu1 %v110_v37 }
 0x18a   :  { %v200_v42 = vpop.f32.mrf.mxu1 }
 0x18b   :  { %v201_v43 = vadd.f32 %v312_v41, %v200_v42 }
 0x18c   :  { %v393_v44 = vpop.f32.mrf.mxu1 }
 0x18d   :  { %v204_v45 = vmax.f32 %v201_v43, 0.0 }
 0x18f   :  { %427 = vmatmul.mubr.f32.vlgmr.msra.gmra.mxu0 %v204_v45 }
 0x24f   :  { %v294_v47 = vpop.f32.mrf.mxu0 }
 0x250   :  { %v295_v48 = vadd.f32 %v313_v46, %v294_v47 }
 0x251   :  { %v428_v49 = vpop.f32.mrf.mxu0 }
 0x252   :  { %v314_v50 = vmul.f32 -1.442695, %v295_v48 }
 0x254   :  { %431 = vpow2.f32 %v314_v50 }
 0x261   :  { %v432_v51 = vpop.eup %431 }
 0x262   :  { %v301_v52 = vadd.f32 1.0, %v432_v51 }
 0x264   :  { %433 = vrcp.f32 %v301_v52 }
 0x271   :  { %v434_v53 = vpop.eup %433 }
 0x272   :  { %305 = vst.msk [vmem:[%s641_s7] sm:$0xff] %vm304_vm2, %v434_v53 }

</bundles_post_ra>
